<compile_context>
chip_gen: v6e
topology: v6e:2x2x1
jax: 0.10.0
libtpu: 0.0.40
codegen_flags: <defaults>
</compile_context>

<pallas_src>
import math
from typing import NamedTuple

import jax
import jax.numpy as jnp
from jax import lax
from jax.experimental import pallas as pl
from jax.experimental.pallas import tpu as pltpu

_HALF_LOG_2PI = 0.5 * math.log(2.0 * math.pi)
_LANE = 128


# -----------------------------------------------------------------------------
# Kernels
#   params = (loc, -0.5 / std^2, -log(std) - 0.5*log(2*pi))  -- SMEM scalars
#   log N(z; loc, std) = (z - loc)^2 * params[1] + params[2]
# -----------------------------------------------------------------------------
def _logprob_kernel(params_ref, z_ref, out_ref):
    loc = params_ref[0]
    a = params_ref[1]            # -0.5 / std^2
    c = params_ref[2]            # -log(std) - 0.5*log(2*pi)
    z = z_ref[...].astype(jnp.float32)
    diff = z - loc
    out_ref[...] = (diff * diff * a + c).astype(out_ref.dtype)


def _make_logprob_sum_kernel(td: int, d: int):
    """Sum-over-latent kernel with D tiled as a trailing reduction grid axis."""
    mask_needed = (d % td) != 0

    def kernel(params_ref, z_ref, out_ref, acc_ref):
        j = pl.program_id(1)

        @pl.when(j == 0)
        def _init():
            acc_ref[...] = jnp.zeros_like(acc_ref)

        loc = params_ref[0]
        a = params_ref[1]
        c = params_ref[2]
        z = z_ref[...].astype(jnp.float32)
        diff = z - loc
        lp = diff * diff * a + c
        if mask_needed:
            # Ragged final D block: zero out the padded lanes before reducing.
            col = j * td + lax.broadcasted_iota(jnp.int32, lp.shape, 1)
            lp = jnp.where(col < d, lp, 0.0)
        acc_ref[...] += jnp.sum(lp, axis=-1, keepdims=True)

        @pl.when(j == pl.num_programs(1) - 1)
        def _finalize():
            out_ref[...] = acc_ref[...].astype(out_ref.dtype)

    return kernel


# -----------------------------------------------------------------------------
# Tiling / wrapper helpers
# -----------------------------------------------------------------------------
def _pack_params(loc, std):
    loc = jnp.asarray(loc, dtype=jnp.float32)
    std = jnp.asarray(std, dtype=jnp.float32)
    neg_half_inv_var = -0.5 / (std * std)
    const = -jnp.log(std) - jnp.float32(_HALF_LOG_2PI)
    return jnp.stack([loc, neg_half_inv_var, const])


def _sublane_multiple(itemsize: int) -> int:
    # f32 -> 8, bf16 -> 16, int8/fp8 -> 32 (sub-32-bit dtypes pack along sublanes)
    return max(8, 32 // max(1, itemsize))


def _choose_tiles(B: int, D: int, itemsize: int, target_bytes: int):
    """Pick (tb, td): ~target_bytes per input tile, layout- and VMEM-friendly."""
    sub = _sublane_multiple(itemsize)

    # Lane (latent) tile: full rows if they fit the budget, else multiples of 128.
    if D * itemsize <= target_bytes:
        td = D
    else:
        td = max(_LANE, (target_bytes // itemsize) // _LANE * _LANE)
        td = min(td, D)

    # Sublane (batch) tile: multiple of the dtype's sublane packing.
    tile_row_bytes = max(1, td * itemsize)
    tb = max(sub, (target_bytes // tile_row_bytes) // sub * sub)
    tb = min(tb, B)

    # Megacore (v7x): if the whole batch fits one tile, split it so both
    # TensorCores get at least one grid step along the "parallel" batch axis.
    if td == D and tb >= B and B > sub:
        half = -(-B // 2)                         # cdiv(B, 2)
        tb = min(tb, -(-half // sub) * sub)       # round up to sublane multiple

    return tb, td


def _vmem_limit_bytes(*buf_bytes: int) -> int:
    # Double-buffered pipeline copies of each buffer, plus generous headroom,
    # capped well below v7x's 64 MiB physical VMEM per TensorCore.
    need = 2 * sum(buf_bytes)
    return int(min(48 << 20, max(16 << 20, 2 * need)))


# -----------------------------------------------------------------------------
# Public wrappers
# -----------------------------------------------------------------------------
def normal_logprob(z: jax.Array, loc, std, *, target_bytes: int = 4 << 20) -> jax.Array:
    """Elementwise log N(z; loc, std) via a Pallas TPU kernel. z: [B, D]."""
    params = _pack_params(loc, std)
    B, D = z.shape
    itemsize = jnp.dtype(z.dtype).itemsize
    tb, td = _choose_tiles(B, D, itemsize, target_bytes)
    tile_bytes = tb * td * itemsize
    return pl.pallas_call(
        _logprob_kernel,
        out_shape=jax.ShapeDtypeStruct((B, D), z.dtype),
        grid=(pl.cdiv(B, tb), pl.cdiv(D, td)),
        in_specs=[
            pl.BlockSpec(memory_space=pltpu.SMEM),            # (loc, a, c) scalars
            pl.BlockSpec((tb, td), lambda i, j: (i, j)),      # batch x latent tiles
        ],
        out_specs=pl.BlockSpec((tb, td), lambda i, j: (i, j)),
        compiler_params=pltpu.CompilerParams(
            dimension_semantics=("parallel", "parallel"),
            vmem_limit_bytes=_vmem_limit_bytes(tile_bytes, tile_bytes),
        ),
    )(params, z)


def normal_logprob_sum(z: jax.Array, loc, std, *, target_bytes: int = 4 << 20) -> jax.Array:
    """Fused sum over the latent axis: returns [B, 1] = log_prob(z).sum(-1).

    Halves HBM traffic vs normal_logprob + framework sum (only z is read;
    the (B, D) elementwise output is never written back).
    """
    params = _pack_params(loc, std)
    B, D = z.shape
    itemsize = jnp.dtype(z.dtype).itemsize
    tb, td = _choose_tiles(B, D, itemsize, target_bytes)
    in_tile = tb * td * itemsize
    out_tile = tb * itemsize
    acc_bytes = tb * 4
    return pl.pallas_call(
        _make_logprob_sum_kernel(td, D),
        out_shape=jax.ShapeDtypeStruct((B, 1), z.dtype),
        grid=(pl.cdiv(B, tb), pl.cdiv(D, td)),                # D last = reduction axis
        in_specs=[
            pl.BlockSpec(memory_space=pltpu.SMEM),
            pl.BlockSpec((tb, td), lambda i, j: (i, j)),
        ],
        out_specs=pl.BlockSpec((tb, 1), lambda i, j: (i, 0)),  # resident across j
        scratch_shapes=[pltpu.VMEM((tb, 1), jnp.float32)],
        compiler_params=pltpu.CompilerParams(
            dimension_semantics=("parallel", "arbitrary"),
            vmem_limit_bytes=_vmem_limit_bytes(in_tile, out_tile) + acc_bytes,
        ),
    )(params, z)


# -----------------------------------------------------------------------------
# JAX-side equivalent of the PyTorch module.
# -----------------------------------------------------------------------------
class PallasNormal(NamedTuple):
    """Stand-in for torch.distributions.Normal returned by Prior.forward()."""
    loc: jax.Array   # scalar (jnp), jit-safe -- never converted via float()
    std: jax.Array   # scalar (jnp)

    def log_prob(self, z: jax.Array) -> jax.Array:
        return normal_logprob(z, self.loc, self.std)

    def log_prob_sum(self, z: jax.Array) -> jax.Array:
        return normal_logprob_sum(z, self.loc, self.std)
    # TODO(synk): rsample() (reparameterized sampling) not implemented; only
    # the log_prob hot path is lowered to Pallas.


class Prior:
    """Prior distribution: Normal(loc, std) with scalar buffers."""

    def __init__(self, loc: float = 0.0, std: float = 1.0) -> None:
        self.loc = jnp.asarray(loc, dtype=jnp.float32)
        self.std = jnp.asarray(std, dtype=jnp.float32)

    def forward(self) -> PallasNormal:
        return PallasNormal(self.loc, self.std)

    __call__ = forward


if __name__ == "__main__":
    prior = Prior(loc=0.0, std=1.0)
    dist = prior()                                            # forward()

    def ref_logprob(z):
        zf = z.astype(jnp.float32)
        return (-0.5 * ((zf - prior.loc) / prior.std) ** 2
                - jnp.log(prior.std) - jnp.float32(_HALF_LOG_2PI))

    # 1) Standard small latent batch (single-tile path), jit-wrapped to show
    #    no host sync / trace-compatibility of loc/std.
    z1 = jax.random.normal(jax.random.PRNGKey(0), (8, 128), dtype=jnp.float32)
    lp1 = jax.block_until_ready(jax.jit(normal_logprob)(z1, prior.loc, prior.std))
    ls1 = jax.block_until_ready(jax.jit(normal_logprob_sum)(z1, prior.loc, prior.std))
    lp1b = jax.block_until_ready(dist.log_prob(z1))           # module-style path
    ref1 = ref_logprob(z1)
    assert lp1.shape == z1.shape and lp1.dtype == z1.dtype
    assert jnp.allclose(lp1, ref1, atol=1e-5, rtol=1e-5), "elementwise mismatch"
    assert jnp.allclose(lp1b, ref1, atol=1e-5, rtol=1e-5), "module-path mismatch"
    assert ls1.shape == (8, 1)
    assert jnp.allclose(ls1, jnp.sum(ref1, axis=-1, keepdims=True),
                        atol=1e-4, rtol=1e-5), "fused-sum mismatch"

    # 2) Force 2-D tiling (tiny tile budget) with ragged edges on both axes:
    #    B=20 (not a multiple of 8 rows per tile), D=640 (not a multiple of td).
    z2 = jax.random.normal(jax.random.PRNGKey(1), (20, 640), dtype=jnp.float32)
    lp2 = jax.block_until_ready(
        normal_logprob(z2, prior.loc, prior.std, target_bytes=2048))
    ls2 = jax.block_until_ready(
        normal_logprob_sum(z2, prior.loc, prior.std, target_bytes=2048))
    ref2 = ref_logprob(z2)
    assert jnp.allclose(lp2, ref2, atol=1e-5, rtol=1e-5), "tiled elementwise mismatch"
    assert jnp.allclose(ls2, jnp.sum(ref2, axis=-1, keepdims=True),
                        atol=1e-4, rtol=1e-4), "tiled fused-sum mismatch"

    print("KERNEL_OK")
</pallas_src>

<mosaic_0001>
module attributes {stable_mosaic.version = 11 : i64} {
  func.func @_logprob_kernel(%arg0: i32, %arg1: i32, %arg2: memref<3xf32, #tpu.memory_space<smem>>, %arg3: memref<8x128xf32, #tpu.memory_space<vmem>>, %arg4: memref<8x128xf32, #tpu.memory_space<vmem>>) attributes {dimension_semantics = [#tpu.dimension_semantics<parallel>, #tpu.dimension_semantics<parallel>], iteration_bounds = array<i64: 1, 1>, scalar_prefetch = 0 : i64, scratch_operands = 0 : i64, tpu.core_type = #tpu.core_type<tc>, window_params = [{transform_indices = @transform_0, window_bounds = array<i64: 3>}, {transform_indices = @transform_1, window_bounds = array<i64: 8, 128>}, {transform_indices = @transform_2, window_bounds = array<i64: 8, 128>}]} {
    %c0 = arith.constant 0 : index
    %0 = memref.load %arg2[%c0] : memref<3xf32, #tpu.memory_space<smem>>
    %c1 = arith.constant 1 : index
    %1 = memref.load %arg2[%c1] : memref<3xf32, #tpu.memory_space<smem>>
    %c2 = arith.constant 2 : index
    %2 = memref.load %arg2[%c2] : memref<3xf32, #tpu.memory_space<smem>>
    %c0_0 = arith.constant 0 : index
    %c0_1 = arith.constant 0 : index
    %3 = vector.load %arg3[%c0_0, %c0_1] : memref<8x128xf32, #tpu.memory_space<vmem>>, vector<8x128xf32>
    %4 = vector.broadcast %0 : f32 to vector<8x128xf32>
    %5 = arith.subf %3, %4 : vector<8x128xf32>
    %6 = arith.mulf %5, %5 : vector<8x128xf32>
    %7 = vector.broadcast %1 : f32 to vector<8x128xf32>
    %8 = arith.mulf %6, %7 : vector<8x128xf32>
    %9 = vector.broadcast %2 : f32 to vector<8x128xf32>
    %10 = arith.addf %8, %9 : vector<8x128xf32>
    %c0_2 = arith.constant 0 : index
    %c0_3 = arith.constant 0 : index
    %11 = vector.load %arg4[%c0_2, %c0_3] : memref<8x128xf32, #tpu.memory_space<vmem>>, vector<8x128xf32>
    tpu.vector_store %arg4[%c0_2, %c0_3], %10 {strides = array<i32>} : memref<8x128xf32, #tpu.memory_space<vmem>>, vector<8x128xf32>,
    return
  }
  func.func @transform_0(%arg0: i32, %arg1: i32) -> i32 {
    %c0_i32 = arith.constant 0 : i32
    %c0_i32_0 = arith.constant 0 : i32
    return %c0_i32 : i32
  }
  func.func @transform_1(%arg0: i32, %arg1: i32) -> (i32, i32) {
    %c0_i32 = arith.constant 0 : i32
    return %arg0, %arg1 : i32, i32
  }
  func.func @transform_2(%arg0: i32, %arg1: i32) -> (i32, i32) {
    %c0_i32 = arith.constant 0 : i32
    return %arg0, %arg1 : i32, i32
  }
}

</mosaic_0001>

<bundles_post_ra>
// kernel: normal_logprob.1
= control target key start
LH: loop header
LB: loop body
LE: loop exit
PB: predicated region body
PF: predicated region fallthrough
CT: control target
= control target key end

     0   :  { %7 = vsyncpa [#allocation4], 0  ;;  %s118_s0 = inlined_call_operand.vmem [shape: f32[3], index: 0, kind: input, shape index: {}]   ;;  %s119_s1 = inlined_call_operand.vmem [shape: f32[8,128], index: 1, kind: input, shape index: {}]   ;;  %s120_s2 = inlined_call_operand.hbm [shape: f32[8,128], index: 2, kind: output, shape index: {}]  }
   0x1   :  { %8 = vsyncpa [#allocation3], 0  ;;  %s15_s11 = sshll.u32 %s118_s0, 4  ;;  %s16_s11 = int_to_ptr.vmem [resolvable:$true] %s15_s11 }
   0x2   :  { %s56_s12 = scalar_lea.vmem %s16_s11, 16  ;;  %p61_p1 = scmp.lt.s32.totalorder %s16_s11, %s16_s11 }
   0x3   :  { %p57_p0 = scmp.ne.s32.totalorder %s16_s11, %s56_s12  ;;  %p62_p2 = scmp.lt.s32.totalorder %s56_s12, %s56_s12 }
   0x5   :  { %p63_p3 = por %p62_p2, %p61_p1 }
   0x7   :  { %p64_p4 = pnand %p63_p3, %p57_p0 }
   0x9   :  { %67 = shalt.err (!%p64_p4)
}
   0xa   :  { %s92_s13 = smov [#allocation2]  }
   0xb   :  { %18 = dma.vmem_to_smem %s16_s11, 16, %s92_s13, [#allocation4]  }
   0xc   :  { %88 = dma.done.wait [#allocation4], 16  }
   0xd   :  { %89 = vsyncadd [#allocation4], 4294967280 }
   0xe   :  { %24 = sfence }
   0xf   :  { %s25_s14 = sld [smem:[#allocation2]]  ;;  %v28_v0 = vld [vmem:[%s119_s1] sm:$0xff]  ;;  %s93_s0 = smov [#allocation5]  }
  0x10   :  { %s52_s15 = sld [smem:[#allocation2 + $0x1]]  ;;  %s43_s19 = sshll.u32 %s93_s0, 4  ;;  %s44_s19 = int_to_ptr.vmem [resolvable:$true] %s43_s19 }
  0x11   :  { %s53_s16 = sld [smem:[#allocation2 + $0x2]]  ;;  %s68_s20 = scalar_lea.vmem %s44_s19, 128 }
  0x12   :  { %p69_p5 = scmp.ne.s32.totalorder %s44_s19, %s68_s20  ;;  %p73_p6 = scmp.lt.s32.totalorder %s44_s19, %s44_s19 }
  0x13   :  { %p74_p7 = scmp.lt.s32.totalorder %s68_s20, %s68_s20 }
  0x15   :  { %v29_v1 = vstv %s25_s14  ;;  %p75_p8 = por %p74_p7, %p73_p6 }
  0x16   :  { %v30_v2 = vsub.f32 %v28_v0, %v29_v1  ;;  %v32_v3 = vstv %s52_s15 }
  0x17   :  { %v34_v5 = vstv %s53_s16  ;;  %p76_p9 = pnand %p75_p8, %p69_p5 }
  0x18   :  { %v31_v4 = vmul.f32 %v30_v2, %v30_v2 }
  0x1a   :  { %v33_v6 = vmul.f32 %v32_v3, %v31_v4 }
  0x1c   :  { %v35_v7 = vadd.f32 %v34_v5, %v33_v6 }
  0x1e   :  { %36 = vst [vmem:[#allocation5] sm:$0xff] %v35_v7 }
  0x1f   :  { %79 = shalt.err (!%p76_p9)
}
  0x20   :  { %46 = dma.vmem_to_hbm [thread:$0]  %s44_s19, 128, %s120_s2, [#allocation3]  }
  0x21   :  { %90 = dma.done.wait [#allocation3], 128  }
  0x22   :  { %91 = vsyncadd [#allocation3], 4294967168 }
  0x23   :  { %50 = vsyncpa [#allocation3], 1 }
  0x24   :  { %51 = vsyncpa [#allocation4], 1 }

</bundles_post_ra>
